<compile_context>
chip_gen: v6e
topology: v6e:2x2x1
jax: 0.10.0
libtpu: 0.0.40
codegen_flags: <defaults>
</compile_context>

<pallas_src>
import jax
import jax.numpy as jnp
from jax.experimental import pallas as pl
from jax.experimental.pallas import tpu as pltpu


def mlp_kernel(x_ref, w1_ref, b1_ref, w2_ref, b2_ref, w3_ref, b3_ref, o_ref):
    """Fused 3-layer MLP on one batch tile: MXU matmuls + VPU ReLUs, all in VMEM."""
    x = x_ref[...]
    tb, in_dim = x.shape

    # ---- fc1 + ReLU ----
    if in_dim <= 8:
        # Tiny contraction dim: do fc1 on the VPU as `in_dim` broadcast
        # multiply-adds instead of pushing a K=in_dim matmul through the MXU.
        # Static Python loop -> fully unrolled at trace time.
        h1 = jnp.zeros((tb, w1_ref.shape[1]), jnp.float32) + b1_ref[...]
        for k in range(in_dim):
            h1 = h1 + (x[:, k:k + 1].astype(jnp.float32)
                       * w1_ref[k:k + 1, :].astype(jnp.float32))
    else:
        h1 = jnp.dot(x, w1_ref[...], preferred_element_type=jnp.float32) + b1_ref[...]
    h1 = jnp.maximum(h1, 0.0)                                   # ReLU (VPU)

    # ---- fc2 + ReLU (MXU, f32 accumulation) ----
    h2 = jnp.dot(h1.astype(w2_ref.dtype), w2_ref[...],
                 preferred_element_type=jnp.float32) + b2_ref[...]
    h2 = jnp.maximum(h2, 0.0)                                   # ReLU (VPU)

    # ---- fc3 (MXU, lane-dense padded output) ----
    out = jnp.dot(h2.astype(w3_ref.dtype), w3_ref[...],
                  preferred_element_type=jnp.float32) + b3_ref[...]
    o_ref[...] = out.astype(o_ref.dtype)


def neural_network_forward(state, params, *, tile_b=512, compute_dtype=jnp.float32):
    """Batched forward pass through the fused Pallas MLP kernel.

    state:  (B, input_dim) float32
    params: dict with w1 (in,f1), b1 (1,f1), w2 (f1,f2), b2 (1,f2),
            w3 (f2,out), b3 (1,out)   -- all float32
    tile_b: batch rows per grid step (256-512 recommended for large B)
    compute_dtype: dtype of the MXU operands (use jnp.bfloat16 for large-batch
                   serving on v6e/v7x; accumulation stays f32 either way).
    """
    w1, b1 = params["w1"], params["b1"]
    w2, b2 = params["w2"], params["b2"]
    w3, b3 = params["w3"], params["b3"]

    B, in_dim = state.shape
    out_dim = w3.shape[1]

    # --- lane-dense output: zero-pad fc3's output columns to a multiple of 128 ---
    out_pad = 128 * pl.cdiv(out_dim, 128)
    if out_pad != out_dim:
        w3 = jnp.pad(w3, ((0, 0), (0, out_pad - out_dim)))
        b3 = jnp.pad(b3, ((0, 0), (0, out_pad - out_dim)))

    # --- batch tiling: TB rows per grid step, batch padded to a multiple of TB ---
    tb = min(tile_b, B)
    tb = max(8, 8 * pl.cdiv(tb, 8))              # sublane multiple
    b_padded = tb * pl.cdiv(B, tb)
    if b_padded != B:
        state = jnp.pad(state, ((0, b_padded - B), (0, 0)))
    grid = (b_padded // tb,)

    # Cast MXU operands to the compute dtype; biases stay f32 (added to f32 acc).
    state_c = state.astype(compute_dtype)
    w1c = w1.astype(compute_dtype)
    w2c = w2.astype(compute_dtype)
    w3c = w3.astype(compute_dtype)

    # Weights/biases: constant block index across the batch grid axis
    # -> VMEM-resident, DMA'd once, never re-fetched per tile.
    resident = lambda arr: pl.BlockSpec(arr.shape, lambda i: (0, 0))

    out = pl.pallas_call(
        mlp_kernel,
        out_shape=jax.ShapeDtypeStruct((b_padded, out_pad), jnp.float32),
        grid=grid,
        in_specs=[
            pl.BlockSpec((tb, in_dim), lambda i: (i, 0)),       # state: tiled over batch
            resident(w1c), resident(b1),
            resident(w2c), resident(b2),
            resident(w3c), resident(b3),
        ],
        out_specs=pl.BlockSpec((tb, out_pad), lambda i: (i, 0)),
        compiler_params=pltpu.CompilerParams(
            dimension_semantics=("parallel",),                  # megacore split on v7x
        ),
    )(state_c, w1c, b1, w2c, b2, w3c, b3)

    # Slice away batch padding and the lane-dense column padding.
    return out[:B, :out_dim]


def init_params(key, input_dim, fc1_dim, fc2_dim, out_dim):
    """Deterministic init mimicking torch.nn.Linear (U(-1/sqrt(fan_in), +1/sqrt(fan_in)))."""
    ks = jax.random.split(key, 6)

    def linear(kw, kb, fan_in, fan_out):
        bound = 1.0 / jnp.sqrt(jnp.float32(fan_in))
        w = jax.random.uniform(kw, (fan_in, fan_out), jnp.float32, -bound, bound)
        b = jax.random.uniform(kb, (1, fan_out), jnp.float32, -bound, bound)
        return w, b

    w1, b1 = linear(ks[0], ks[1], input_dim, fc1_dim)
    w2, b2 = linear(ks[2], ks[3], fc1_dim, fc2_dim)
    w3, b3 = linear(ks[4], ks[5], fc2_dim, out_dim)
    return {"w1": w1, "b1": b1, "w2": w2, "b2": b2, "w3": w3, "b3": b3}


def reference_forward(state, p):
    """Pure-JAX reference (matches PyTorch forward semantics)."""
    h1 = jnp.maximum(state @ p["w1"] + p["b1"], 0.0)
    h2 = jnp.maximum(h1 @ p["w2"] + p["b2"], 0.0)
    return h2 @ p["w3"] + p["b3"]


if __name__ == "__main__":
    # CartPole-style dims: state=4 features, two hidden layers, 2 actions.
    input_dim, fc1_dim, fc2_dim, out_dim = 4, 32, 32, 2

    key = jax.random.PRNGKey(0)
    k_params, k_small, k_big = jax.random.split(key, 3)
    params = init_params(k_params, input_dim, fc1_dim, fc2_dim, out_dim)

    # ---- small batch (single grid tile), f32 ----
    state_small = jax.random.normal(k_small, (8, input_dim), jnp.float32)
    act_small = jax.block_until_ready(neural_network_forward(state_small, params))
    ref_small = reference_forward(state_small, params)
    assert act_small.shape == (8, out_dim)
    assert jnp.allclose(act_small, ref_small, atol=1e-5, rtol=1e-5), "small-batch mismatch"

    # ---- large batch (multiple tiles, batch padding, parallel grid), f32 ----
    state_big = jax.random.normal(k_big, (1000, input_dim), jnp.float32)
    act_big = jax.block_until_ready(
        neural_network_forward(state_big, params, tile_b=256))
    ref_big = reference_forward(state_big, params)
    assert act_big.shape == (1000, out_dim)
    assert jnp.allclose(act_big, ref_big, atol=1e-5, rtol=1e-5), "large-batch mismatch"

    # ---- large batch, bf16 MXU operands (v6e/v7x serving path), f32 accumulation ----
    act_bf16 = jax.block_until_ready(
        neural_network_forward(state_big, params, tile_b=256,
                               compute_dtype=jnp.bfloat16))
    assert act_bf16.shape == (1000, out_dim)
    assert jnp.allclose(act_bf16, ref_big, atol=1e-1, rtol=1e-1), "bf16 mismatch"

    # TODO(synk): Adam optimizer / MSELoss / device placement from the PyTorch
    # module are training-side machinery, not part of the forward pass.
    print("KERNEL_OK")
</pallas_src>

<mosaic_0001>
module attributes {stable_mosaic.version = 11 : i64} {
  func.func @mlp_kernel(%arg0: i32, %arg1: memref<8x4xf32, #tpu.memory_space<vmem>>, %arg2: memref<4x32xf32, #tpu.memory_space<vmem>>, %arg3: memref<1x32xf32, #tpu.memory_space<vmem>>, %arg4: memref<32x32xf32, #tpu.memory_space<vmem>>, %arg5: memref<1x32xf32, #tpu.memory_space<vmem>>, %arg6: memref<32x128xf32, #tpu.memory_space<vmem>>, %arg7: memref<1x128xf32, #tpu.memory_space<vmem>>, %arg8: memref<8x128xf32, #tpu.memory_space<vmem>>) attributes {dimension_semantics = [#tpu.dimension_semantics<parallel>], iteration_bounds = array<i64: 1>, scalar_prefetch = 0 : i64, scratch_operands = 0 : i64, tpu.core_type = #tpu.core_type<tc>, window_params = [{transform_indices = @transform_0, window_bounds = array<i64: 8, 4>}, {pipeline_mode = #tpu.pipeline_mode<synchronous>, transform_indices = @transform_1, window_bounds = array<i64: 4, 32>}, {pipeline_mode = #tpu.pipeline_mode<synchronous>, transform_indices = @transform_2, window_bounds = array<i64: 1, 32>}, {pipeline_mode = #tpu.pipeline_mode<synchronous>, transform_indices = @transform_3, window_bounds = array<i64: 32, 32>}, {pipeline_mode = #tpu.pipeline_mode<synchronous>, transform_indices = @transform_4, window_bounds = array<i64: 1, 32>}, {pipeline_mode = #tpu.pipeline_mode<synchronous>, transform_indices = @transform_5, window_bounds = array<i64: 32, 128>}, {pipeline_mode = #tpu.pipeline_mode<synchronous>, transform_indices = @transform_6, window_bounds = array<i64: 1, 128>}, {transform_indices = @transform_7, window_bounds = array<i64: 8, 128>}]} {
    %c0 = arith.constant 0 : index
    %c0_0 = arith.constant 0 : index
    %0 = vector.load %arg1[%c0, %c0_0] : memref<8x4xf32, #tpu.memory_space<vmem>>, vector<8x4xf32>
    %cst = arith.constant 0.000000e+00 : f32
    %1 = vector.broadcast %cst : f32 to vector<8x32xf32>
    %c0_1 = arith.constant 0 : index
    %c0_2 = arith.constant 0 : index
    %2 = vector.load %arg3[%c0_1, %c0_2] : memref<1x32xf32, #tpu.memory_space<vmem>>, vector<1x32xf32>
    %3 = vector.broadcast %2 : vector<1x32xf32> to vector<8x32xf32>
    %4 = arith.addf %1, %3 : vector<8x32xf32>
    %5 = vector.extract_strided_slice %0 {offsets = [0, 0], sizes = [8, 1], strides = [1, 1]} : vector<8x4xf32> to vector<8x1xf32>
    %c0_3 = arith.constant 0 : index
    %c0_4 = arith.constant 0 : index
    %6 = vector.load %arg2[%c0_3, %c0_4] : memref<4x32xf32, #tpu.memory_space<vmem>>, vector<1x32xf32>
    %7 = vector.broadcast %5 : vector<8x1xf32> to vector<8x32xf32>
    %8 = vector.broadcast %6 : vector<1x32xf32> to vector<8x32xf32>
    %9 = arith.mulf %7, %8 : vector<8x32xf32>
    %10 = arith.addf %4, %9 : vector<8x32xf32>
    %11 = vector.extract_strided_slice %0 {offsets = [0, 1], sizes = [8, 1], strides = [1, 1]} : vector<8x4xf32> to vector<8x1xf32>
    %c1 = arith.constant 1 : index
    %c0_5 = arith.constant 0 : index
    %12 = vector.load %arg2[%c1, %c0_5] : memref<4x32xf32, #tpu.memory_space<vmem>>, vector<1x32xf32>
    %13 = vector.broadcast %11 : vector<8x1xf32> to vector<8x32xf32>
    %14 = vector.broadcast %12 : vector<1x32xf32> to vector<8x32xf32>
    %15 = arith.mulf %13, %14 : vector<8x32xf32>
    %16 = arith.addf %10, %15 : vector<8x32xf32>
    %17 = vector.extract_strided_slice %0 {offsets = [0, 2], sizes = [8, 1], strides = [1, 1]} : vector<8x4xf32> to vector<8x1xf32>
    %c2 = arith.constant 2 : index
    %c0_6 = arith.constant 0 : index
    %18 = vector.load %arg2[%c2, %c0_6] : memref<4x32xf32, #tpu.memory_space<vmem>>, vector<1x32xf32>
    %19 = vector.broadcast %17 : vector<8x1xf32> to vector<8x32xf32>
    %20 = vector.broadcast %18 : vector<1x32xf32> to vector<8x32xf32>
    %21 = arith.mulf %19, %20 : vector<8x32xf32>
    %22 = arith.addf %16, %21 : vector<8x32xf32>
    %23 = vector.extract_strided_slice %0 {offsets = [0, 3], sizes = [8, 1], strides = [1, 1]} : vector<8x4xf32> to vector<8x1xf32>
    %c3 = arith.constant 3 : index
    %c0_7 = arith.constant 0 : index
    %24 = vector.load %arg2[%c3, %c0_7] : memref<4x32xf32, #tpu.memory_space<vmem>>, vector<1x32xf32>
    %25 = vector.broadcast %23 : vector<8x1xf32> to vector<8x32xf32>
    %26 = vector.broadcast %24 : vector<1x32xf32> to vector<8x32xf32>
    %27 = arith.mulf %25, %26 : vector<8x32xf32>
    %28 = arith.addf %22, %27 : vector<8x32xf32>
    %cst_8 = arith.constant 0.000000e+00 : f32
    %29 = vector.broadcast %cst_8 : f32 to vector<8x32xf32>
    %30 = arith.maximumf %28, %29 : vector<8x32xf32>
    %c0_9 = arith.constant 0 : index
    %c0_10 = arith.constant 0 : index
    %31 = vector.load %arg4[%c0_9, %c0_10] : memref<32x32xf32, #tpu.memory_space<vmem>>, vector<32x32xf32>
    %cst_11 = arith.constant dense<0.000000e+00> : vector<8x32xf32>
    %32 = tpu.matmul %30, %31, %cst_11 {dimension_numbers = #tpu.dot_dimension_numbers<[1], [0], [0], [1], [0, 0, 1, 1], [], []>} : vector<8x32xf32>, vector<32x32xf32>, vector<8x32xf32> -> vector<8x32xf32>
    %c0_12 = arith.constant 0 : index
    %c0_13 = arith.constant 0 : index
    %33 = vector.load %arg5[%c0_12, %c0_13] : memref<1x32xf32, #tpu.memory_space<vmem>>, vector<1x32xf32>
    %34 = vector.broadcast %33 : vector<1x32xf32> to vector<8x32xf32>
    %35 = arith.addf %32, %34 : vector<8x32xf32>
    %cst_14 = arith.constant 0.000000e+00 : f32
    %36 = vector.broadcast %cst_14 : f32 to vector<8x32xf32>
    %37 = arith.maximumf %35, %36 : vector<8x32xf32>
    %c0_15 = arith.constant 0 : index
    %c0_16 = arith.constant 0 : index
    %38 = vector.load %arg6[%c0_15, %c0_16] : memref<32x128xf32, #tpu.memory_space<vmem>>, vector<32x128xf32>
    %cst_17 = arith.constant dense<0.000000e+00> : vector<8x128xf32>
    %39 = tpu.matmul %37, %38, %cst_17 {dimension_numbers = #tpu.dot_dimension_numbers<[1], [0], [0], [1], [0, 0, 1, 1], [], []>} : vector<8x32xf32>, vector<32x128xf32>, vector<8x128xf32> -> vector<8x128xf32>
    %c0_18 = arith.constant 0 : index
    %c0_19 = arith.constant 0 : index
    %40 = vector.load %arg7[%c0_18, %c0_19] : memref<1x128xf32, #tpu.memory_space<vmem>>, vector<1x128xf32>
    %41 = vector.broadcast %40 : vector<1x128xf32> to vector<8x128xf32>
    %42 = arith.addf %39, %41 : vector<8x128xf32>
    %c0_20 = arith.constant 0 : index
    %c0_21 = arith.constant 0 : index
    %43 = vector.load %arg8[%c0_20, %c0_21] : memref<8x128xf32, #tpu.memory_space<vmem>>, vector<8x128xf32>
    tpu.vector_store %arg8[%c0_20, %c0_21], %42 {strides = array<i32>} : memref<8x128xf32, #tpu.memory_space<vmem>>, vector<8x128xf32>,
    return
  }
  func.func @transform_0(%arg0: i32) -> (i32, i32) {
    %c0_i32 = arith.constant 0 : i32
    %c0_i32_0 = arith.constant 0 : i32
    return %arg0, %c0_i32 : i32, i32
  }
  func.func @transform_1(%arg0: i32) -> (i32, i32) {
    %c0_i32 = arith.constant 0 : i32
    %c0_i32_0 = arith.constant 0 : i32
    %c0_i32_1 = arith.constant 0 : i32
    return %c0_i32, %c0_i32_0 : i32, i32
  }
  func.func @transform_2(%arg0: i32) -> (i32, i32) {
    %c0_i32 = arith.constant 0 : i32
    %c0_i32_0 = arith.constant 0 : i32
    %c0_i32_1 = arith.constant 0 : i32
    return %c0_i32, %c0_i32_0 : i32, i32
  }
  func.func @transform_3(%arg0: i32) -> (i32, i32) {
    %c0_i32 = arith.constant 0 : i32
    %c0_i32_0 = arith.constant 0 : i32
    %c0_i32_1 = arith.constant 0 : i32
    return %c0_i32, %c0_i32_0 : i32, i32
  }
  func.func @transform_4(%arg0: i32) -> (i32, i32) {
    %c0_i32 = arith.constant 0 : i32
    %c0_i32_0 = arith.constant 0 : i32
    %c0_i32_1 = arith.constant 0 : i32
    return %c0_i32, %c0_i32_0 : i32, i32
  }
  func.func @transform_5(%arg0: i32) -> (i32, i32) {
    %c0_i32 = arith.constant 0 : i32
    %c0_i32_0 = arith.constant 0 : i32
    %c0_i32_1 = arith.constant 0 : i32
    return %c0_i32, %c0_i32_0 : i32, i32
  }
  func.func @transform_6(%arg0: i32) -> (i32, i32) {
    %c0_i32 = arith.constant 0 : i32
    %c0_i32_0 = arith.constant 0 : i32
    %c0_i32_1 = arith.constant 0 : i32
    return %c0_i32, %c0_i32_0 : i32, i32
  }
  func.func @transform_7(%arg0: i32) -> (i32, i32) {
    %c0_i32 = arith.constant 0 : i32
    %c0_i32_0 = arith.constant 0 : i32
    return %arg0, %c0_i32 : i32, i32
  }
}

</mosaic_0001>

<bundles_post_ra>
// kernel: tpu_custom_call.1
= control target key start
LH: loop header
LB: loop body
LE: loop exit
PB: predicated region body
PF: predicated region fallthrough
CT: control target
= control target key end

     0   :  { %12 = vsyncpa [#allocation3], 0  ;;  %s506_s0 = inlined_call_operand.vmem [shape: f32[8,4], index: 0, kind: input, shape index: {}]   ;;  %s507_s1 = inlined_call_operand.vmem [shape: f32[4,32], index: 1, kind: input, shape index: {}]   ;;  %s508_s2 = inlined_call_operand.vmem [shape: f32[1,32], index: 2, kind: input, shape index: {}]   ;;  %s509_s3 = inlined_call_operand.hbm [shape: f32[32,32], index: 3, kind: input, shape index: {}]   ;;  %s510_s4 = inlined_call_operand.vmem [shape: f32[1,32], index: 4, kind: input, shape index: {}]   ;;  %s511_s5 = inlined_call_operand.hbm [shape: f32[32,128], index: 5, kind: input, shape index: {}]   ;;  %s512_s6 = inlined_call_operand.vmem [shape: f32[1,128], index: 6, kind: input, shape index: {}]   ;;  %s513_s7 = inlined_call_operand.hbm [shape: f32[8,128], index: 7, kind: output, shape index: {}]  }
   0x1   :  { %13 = vsyncpa [#allocation6], 0 }
   0x2   :  { %14 = vsyncpa [#allocation4], 0  ;;  %s420_s24 = smov [#allocation2]  }
   0x3   :  { %s26_s25 = sshll.u32 %s420_s24, 4  ;;  %s27_s25 = int_to_ptr.vmem [resolvable:$true] %s26_s25 }
   0x4   :  { %s362_s26 = scalar_lea.vmem %s27_s25, 512  ;;  %p367_p1 = scmp.lt.s32.totalorder %s27_s25, %s27_s25 }
   0x5   :  { %p363_p0 = scmp.ne.s32.totalorder %s27_s25, %s362_s26  ;;  %p368_p2 = scmp.lt.s32.totalorder %s362_s26, %s362_s26 }
   0x7   :  { %p369_p3 = por %p368_p2, %p367_p1 }
   0x9   :  { %p370_p4 = pnand %p369_p3, %p363_p0 }
   0xb   :  { %373 = shalt.err (!%p370_p4)
}
   0xc   :  { %s421_s27 = smov 128   ;;  %s422_s28 = smov 8  }
   0xd   :  { %32 = dma.hbm_to_vmem [thread:$0]  %s509_s3, 512, %s27_s25, [#allocation3], %s421_s27, %s421_s27, %s422_s28  }
   0xe   :  { %s423_s8 = smov [#allocation5]  }
   0xf   :  { %s40_s9 = sshll.u32 %s423_s8, 4  ;;  %s41_s9 = int_to_ptr.vmem [resolvable:$true] %s40_s9 }
  0x10   :  { %s382_s10 = scalar_lea.vmem %s41_s9, 512  ;;  %p387_p6 = scmp.lt.s32.totalorder %s41_s9, %s41_s9 }
  0x11   :  { %p383_p5 = scmp.ne.s32.totalorder %s41_s9, %s382_s10  ;;  %p388_p7 = scmp.lt.s32.totalorder %s382_s10, %s382_s10 }
  0x13   :  { %p389_p8 = por %p388_p7, %p387_p6 }
  0x15   :  { %p390_p9 = pnand %p389_p8, %p383_p5 }
  0x17   :  { %393 = shalt.err (!%p390_p9)
}
  0x18   :  { %46 = dma.hbm_to_vmem [thread:$0]  %s511_s5, 512, %s41_s9, [#allocation6], %s421_s27, %s421_s27, %s422_s28  }
  0x19   :  { %414 = dma.done.wait [#allocation3], 512  }
  0x1a   :  { %415 = vsyncadd [#allocation3], 4294966784 }
  0x1b   :  { %416 = dma.done.wait [#allocation6], 512  }
  0x1c   :  { %417 = vsyncadd [#allocation6], 4294966784  ;;  %v424_v0 = vmov 0   ;;  %v425_v1 = vmov 2   ;;  %v55_v2 = vld [vmem:[%s506_s0] sm:$0xff]  ;;  %v426_v3 = vmov 0.0  }
  0x1d   :  { %349 = vset.pattern.permute.xlu0 %v424_v0  ;;  %351 = vset.pattern.permute.xlu1 %v425_v1  ;;  %v113_v4 = vld [vmem:[#allocation2 + $0x18] sm:$0xff]  ;;  %v427_v5 = vmov 1   ;;  %v428_v6 = vmov 3   ;;  %v112_v7 = vld [vmem:[#allocation2 + $0x10] sm:$0xff]  ;;  %v111_v8 = vld [vmem:[#allocation2 + $0x8] sm:$0xff]  ;;  %vm429_vm0 = vmmov 0  }
  0x1e   :  { %67 = vperm.xlu0 %349, %v55_v2   ;;  %89 = vperm.xlu1 %351, %v55_v2   ;;  %v110_v9 = vld [vmem:[#allocation2] sm:$0xff]  ;;  %v199_v10 = vld [vmem:[#allocation5 + $0x18] sm:$0xff]  ;;  %vm121_vm1 = vcmask 261120   ;;  %v198_v29 = vld [vmem:[#allocation5 + $0x10] sm:$0xff]  ;;  %s430_s24 = smov [#allocation7]  }
  0x1f   :  { %316 = vmatprep.subr.mxu0 %v426_v3  ;;  %327 = vmatprep.subr.mxu1 %v426_v3  ;;  %v298_v11 = vld [vmem:[%s507_s1] ss:$0 sm:$0xff]  ;;  %v299_v16 = vld [vmem:[%s507_s1 + $0x1] ss:$0 sm:$0xff]  ;;  %v300_v17 = vld [vmem:[%s507_s1 + $0x2] ss:$0 sm:$0xff] }
  0x20   :  { %317 = vmatpush3.msra.mxu0 %v113_v4  ;;  %324 = vmatprep.mubr.msk.f32.mxu0 %vm429_vm0, %v426_v3  ;;  %v297_v15 = vld [vmem:[%s508_s2] ss:$0 sm:$0xff]  ;;  %v301_v19 = vld [vmem:[%s507_s1 + $0x3] ss:$0 sm:$0xff]  ;;  %v197_v30 = vld [vmem:[#allocation5 + $0x8] sm:$0xff]  ;;  %s287_s25 = sshll.u32 %s430_s24, 4  ;;  %s288_s25 = int_to_ptr.vmem [resolvable:$true] %s287_s25 }
  0x21   :  { %318 = vmatprep.subr.mxu0 %v426_v3  ;;  %335 = vmatprep.mubr.msk.f32.mxu1 %vm429_vm0, %v426_v3  ;;  %v196_v31 = vld [vmem:[#allocation5] sm:$0xff]  ;;  %s394_s26 = scalar_lea.vmem %s288_s25, 128  ;;  %p399_p11 = scmp.lt.s32.totalorder %s288_s25, %s288_s25 }
  0x22   :  { %350 = vset.pattern.permute.xlu0 %v427_v5  ;;  %352 = vset.pattern.permute.xlu1 %v428_v6  ;;  %v302_v32 = vld [vmem:[%s510_s4] ss:$0 sm:$0xff]  ;;  %p395_p10 = scmp.ne.s32.totalorder %s288_s25, %s394_s26  ;;  %p400_p12 = scmp.lt.s32.totalorder %s394_s26, %s394_s26 }
  0x23   :  { %78 = vperm.xlu0 %350, %v55_v2   ;;  %100 = vperm.xlu1 %352, %v55_v2   ;;  %v304_v37 = vld [vmem:[%s512_s6] ss:$0 sm:$0xff] }
  0x24   :  { %319 = vmatpush3.msra.mxu0 %v112_v7  ;;  %328 = vmatpush3.msra.mxu1 %v199_v10  ;;  %p401_p13 = por %p400_p12, %p399_p11 }
  0x25   :  { %320 = vmatprep.subr.mxu0 %v426_v3  ;;  %329 = vmatprep.subr.mxu1 %v426_v3 }
  0x26   :  { %321 = vmatpush3.msra.mxu0 %v111_v8  ;;  %330 = vmatpush3.msra.mxu1 %v198_v29  ;;  %p402_p0 = pnand %p401_p13, %p395_p10 }
  0x27   :  { %353 = vset.pattern.permute.xlu0 %v428_v6  ;;  %322 = vmatprep.subr.mxu0 %v426_v3 }
  0x28   :  { %323 = vmatpush3.msra.mxu0 %v110_v9  ;;  %331 = vmatprep.subr.mxu1 %v426_v3 }
  0x29   :  { %332 = vmatpush3.msra.mxu1 %v197_v30 }
  0x2a   :  { %333 = vmatprep.subr.mxu1 %v426_v3 }
  0x2b   :  { %334 = vmatpush3.msra.mxu1 %v196_v31 }
  0x99   :  { %v68_v12 = vpop.permute.xlu0 %67  ;;  %v90_v13 = vpop.permute.xlu1 %89 }
  0x9a   :  { %v74_v14 = vmul.f32 %v298_v11, %v68_v12  ;;  %v96_v23 = vmul.f32 %v300_v17, %v90_v13 }
  0x9c   :  { %v75_v21 = vadd.f32 %v297_v15, %v74_v14 }
  0x9e   :  { %v79_v18 = vpop.permute.xlu0 %78  ;;  %v101_v20 = vpop.permute.xlu1 %100 }
  0x9f   :  { %v85_v22 = vmul.f32 %v299_v16, %v79_v18  ;;  %v107_v25 = vmul.f32 %v301_v19, %v101_v20 }
  0xa1   :  { %v86_v24 = vadd.f32 %v85_v22, %v75_v21 }
  0xa3   :  { %v97_v26 = vadd.f32 %v96_v23, %v86_v24 }
  0xa5   :  { %v108_v27 = vadd.f32 %v107_v25, %v97_v26 }
  0xa7   :  { %v109_v28 = vmax.f32 %v108_v27, 0.0 }
  0xa9   :  { %325 = vmatmul.mubr.msk.f32.vlgmr.msra.gmra.mxu0 %vm121_vm1, %v109_v28 }
 0x169   :  { %v191_v33 = vpop.f32.mrf.mxu0 }
 0x16a   :  { %v192_v34 = vadd.f32 %v302_v32, %v191_v33 }
 0x16b   :  { %v326_v35 = vpop.f32.mrf.mxu0 }
 0x16c   :  { %v195_v36 = vmax.f32 %v192_v34, 0.0 }
 0x16e   :  { %336 = vmatmul.mubr.msk.f32.vlgmr.msra.gmra.mxu1 %vm121_vm1, %v195_v36 }
 0x22e   :  { %v276_v38 = vpop.f32.mrf.mxu1 }
 0x22f   :  { %v277_v39 = vadd.f32 %v304_v37, %v276_v38 }
 0x230   :  { %v337_v40 = vpop.f32.mrf.mxu1 }
 0x231   :  { %280 = vst [vmem:[#allocation7] sm:$0xff] %v277_v39 }
 0x232   :  { %405 = shalt.err (!%p402_p0)
}
 0x233   :  { %290 = dma.vmem_to_hbm [thread:$0]  %s288_s25, 128, %s513_s7, [#allocation4]  }
 0x234   :  { %418 = dma.done.wait [#allocation4], 128  }
 0x235   :  { %419 = vsyncadd [#allocation4], 4294967168 }
 0x236   :  { %294 = vsyncpa [#allocation3], 1 }
 0x237   :  { %295 = vsyncpa [#allocation6], 1 }
 0x238   :  { %296 = vsyncpa [#allocation4], 1 }

</bundles_post_ra>
